<compile_context>
chip_gen: v6e
topology: v6e:2x2x1
jax: 0.10.0
libtpu: 0.0.40
codegen_flags: <defaults>
</compile_context>

<pallas_src>
import functools

import jax
import jax.numpy as jnp
from jax.experimental import pallas as pl
from jax.experimental.pallas import tpu as pltpu

HIDDEN = 64       # per-branch hidden width (matches the PyTorch module)
_SUBLANE = 16     # bf16 sublane packing for slab row offsets
_LANE = 128
TM = 512          # batch rows per grid step (sized for v7x 64 MiB VMEM)


def _round_up(x, m):
    return ((x + m - 1) // m) * m


def _a2c_kernel(x_ref, w_ref, b_ref, out_ref, *, in_size, in_pad, slab_w):
    """Fused actor+critic MLP: 3 bf16 matmuls, f32 accumulation/bias/ReLU."""
    x = x_ref[...].astype(jnp.bfloat16)               # (tm, in_size), cast in-kernel

    # Static, 16-aligned slices of the single resident weight slab (no copies).
    w1 = w_ref[pl.ds(0, in_size), :]                  # (in_size, slab_w) bf16
    w2 = w_ref[pl.ds(in_pad, slab_w), :]              # (slab_w, slab_w)  bf16
    w3 = w_ref[pl.ds(in_pad + slab_w, slab_w), :]     # (slab_w, slab_w)  bf16

    b1 = b_ref[pl.ds(0, 1), :]                        # (1, slab_w) f32
    b2 = b_ref[pl.ds(1, 1), :]
    b3 = b_ref[pl.ds(2, 1), :]

    # Layer 1: both branches at once (actor cols [0:64], critic cols [64:128]).
    h = jnp.dot(x, w1, preferred_element_type=jnp.float32) + b1
    h = jnp.maximum(h, 0.0).astype(jnp.bfloat16)
    # Layer 2: block-diagonal fused weight keeps the two branches independent.
    h = jnp.dot(h, w2, preferred_element_type=jnp.float32) + b2
    h = jnp.maximum(h, 0.0).astype(jnp.bfloat16)
    # Layer 3: policy in cols [0:A], value in col A of one lane-dense output.
    out_ref[...] = jnp.dot(h, w3, preferred_element_type=jnp.float32) + b3


def pack_params(params, in_size, num_actions, hidden=HIDDEN):
    """Fuse actor+critic params into one bf16 weight slab + one f32 bias slab.

    Call ONCE per parameter update (not per forward step).  Row offsets of the
    slab are kept 16-aligned so in-kernel slices stay tile-aligned/copy-free.
    """
    fused = 2 * hidden                                   # 128
    in_pad = _round_up(max(in_size, 1), _SUBLANE)
    slab_w = max(fused, _round_up(num_actions + 1, _LANE))

    w1 = jnp.zeros((in_pad, slab_w), jnp.float32)
    w1 = w1.at[:in_size, :hidden].set(params["wa1"])
    w1 = w1.at[:in_size, hidden:fused].set(params["wc1"])

    w2 = jnp.zeros((slab_w, slab_w), jnp.float32)        # block-diagonal
    w2 = w2.at[:hidden, :hidden].set(params["wa2"])
    w2 = w2.at[hidden:fused, hidden:fused].set(params["wc2"])

    w3 = jnp.zeros((slab_w, slab_w), jnp.float32)
    w3 = w3.at[:hidden, :num_actions].set(params["wa3"])
    w3 = w3.at[hidden:fused, num_actions:num_actions + 1].set(params["wc3"])

    w_slab = jnp.concatenate([w1, w2, w3], axis=0).astype(jnp.bfloat16)

    b_slab = jnp.zeros((8, slab_w), jnp.float32)         # rows 0..2 used
    b_slab = b_slab.at[0, :hidden].set(params["ba1"][0])
    b_slab = b_slab.at[0, hidden:fused].set(params["bc1"][0])
    b_slab = b_slab.at[1, :hidden].set(params["ba2"][0])
    b_slab = b_slab.at[1, hidden:fused].set(params["bc2"][0])
    b_slab = b_slab.at[2, :num_actions].set(params["ba3"][0])
    b_slab = b_slab.at[2, num_actions].set(params["bc3"][0, 0])

    meta = dict(in_size=in_size, in_pad=in_pad, slab_w=slab_w,
                num_actions=num_actions)
    return w_slab, b_slab, meta


def a2c_forward(state, w_slab, b_slab, meta, *, tm=TM):
    """Pallas-backed A2CNet.forward -> (policy, torch.squeeze(value)).

    Batch many env states / rollout timesteps into ONE call: the parameter
    slabs are DMA'd once per call and stay resident across the batch grid.
    """
    B, in_size = state.shape
    assert in_size == meta["in_size"]
    in_pad = meta["in_pad"]
    slab_w = meta["slab_w"]
    A = meta["num_actions"]

    # Single full-array block for small batches, otherwise a 1-D grid over B
    # (Pallas handles a ragged trailing block).
    if B <= tm:
        tm_eff, grid = B, (1,)
    else:
        tm_eff, grid = tm, (pl.cdiv(B, tm),)

    kernel = functools.partial(_a2c_kernel, in_size=in_size,
                               in_pad=in_pad, slab_w=slab_w)

    flops = 2 * B * slab_w * (in_size + 2 * slab_w)
    bytes_accessed = (w_slab.size * w_slab.dtype.itemsize
                      + b_slab.size * b_slab.dtype.itemsize
                      + B * (in_size * 4 + slab_w * 4))

    out = pl.pallas_call(
        kernel,
        out_shape=jax.ShapeDtypeStruct((B, slab_w), jnp.float32),
        grid=grid,
        in_specs=[
            pl.BlockSpec((tm_eff, in_size), lambda i: (i, 0)),   # activations
            pl.BlockSpec(w_slab.shape, lambda i: (0, 0)),        # resident weights
            pl.BlockSpec(b_slab.shape, lambda i: (0, 0)),        # resident biases
        ],
        out_specs=pl.BlockSpec((tm_eff, slab_w), lambda i: (i, 0)),
        compiler_params=pltpu.CompilerParams(
            dimension_semantics=("parallel",)),
        cost_estimate=pl.CostEstimate(flops=flops, transcendentals=0,
                                      bytes_accessed=bytes_accessed),
    )(state.astype(jnp.float32), w_slab, b_slab)

    policy = out[:, :A]
    # torch.squeeze removes all size-1 dims of the (B, 1) critic output.
    value = jnp.squeeze(out[:, A:A + 1])
    return policy, value


def init_params(key, in_size, num_actions, hidden=HIDDEN):
    """Deterministic PyTorch-style Linear init; weights stored as (in, out)."""

    def linear(key, fan_in, fan_out):
        kw, kb = jax.random.split(key)
        bound = 1.0 / jnp.sqrt(float(fan_in))
        w = jax.random.uniform(kw, (fan_in, fan_out), jnp.float32, -bound, bound)
        b = jax.random.uniform(kb, (1, fan_out), jnp.float32, -bound, bound)
        return w, b

    keys = jax.random.split(key, 6)
    wa1, ba1 = linear(keys[0], in_size, hidden)
    wa2, ba2 = linear(keys[1], hidden, hidden)
    wa3, ba3 = linear(keys[2], hidden, num_actions)
    wc1, bc1 = linear(keys[3], in_size, hidden)
    wc2, bc2 = linear(keys[4], hidden, hidden)
    wc3, bc3 = linear(keys[5], hidden, 1)
    return dict(wa1=wa1, ba1=ba1, wa2=wa2, ba2=ba2, wa3=wa3, ba3=ba3,
                wc1=wc1, bc1=bc1, wc2=wc2, bc2=bc2, wc3=wc3, bc3=bc3)


def a2c_forward_ref(state, params):
    """Plain-JAX f32 reference (matches the PyTorch module exactly)."""
    def mlp(x, w1, b1, w2, b2, w3, b3):
        h = jnp.maximum(x @ w1 + b1, 0.0)
        h = jnp.maximum(h @ w2 + b2, 0.0)
        return h @ w3 + b3

    policy = mlp(state, params["wa1"], params["ba1"], params["wa2"],
                 params["ba2"], params["wa3"], params["ba3"])
    value = mlp(state, params["wc1"], params["bc1"], params["wc2"],
                params["bc2"], params["wc3"], params["bc3"])
    return policy, jnp.squeeze(value)


if __name__ == "__main__":
    # Small shapes consistent with the module: batch=2, in_size=16, 4 actions.
    batch, in_size, num_actions = 2, 16, 4

    key = jax.random.PRNGKey(0)
    k_params, k_state, k_big = jax.random.split(key, 3)

    params = init_params(k_params, in_size, num_actions)
    state = jax.random.normal(k_state, (batch, in_size), jnp.float32)

    # Pack once (hoisted out of the per-step forward).
    w_slab, b_slab, meta = pack_params(params, in_size, num_actions)
    w_slab = jax.block_until_ready(w_slab)
    b_slab = jax.block_until_ready(b_slab)

    # --- small per-step batch (single full-array block) ---
    policy, value = a2c_forward(state, w_slab, b_slab, meta)
    policy = jax.block_until_ready(policy)
    value = jax.block_until_ready(value)

    ref_policy, ref_value = a2c_forward_ref(state, params)
    assert policy.shape == (batch, num_actions)
    assert value.shape == (batch,)
    assert jnp.allclose(policy, ref_policy, atol=2e-2, rtol=2e-2)
    assert jnp.allclose(value, ref_value, atol=2e-2, rtol=2e-2)

    # --- rollout-sized batch (exercises the 1-D grid with resident weights) ---
    big_b = 1024
    big_state = jax.random.normal(k_big, (big_b, in_size), jnp.float32)
    big_policy, big_value = a2c_forward(big_state, w_slab, b_slab, meta)
    big_policy = jax.block_until_ready(big_policy)
    big_value = jax.block_until_ready(big_value)

    ref_big_policy, ref_big_value = a2c_forward_ref(big_state, params)
    assert big_policy.shape == (big_b, num_actions)
    assert big_value.shape == (big_b,)
    assert jnp.allclose(big_policy, ref_big_policy, atol=3e-2, rtol=3e-2)
    assert jnp.allclose(big_value, ref_big_value, atol=3e-2, rtol=3e-2)

    print("KERNEL_OK")
</pallas_src>

<mosaic_0001>
module attributes {stable_mosaic.version = 11 : i64} {
  func.func @_a2c_kernel(%arg0: i32, %arg1: memref<2x16xf32, #tpu.memory_space<vmem>>, %arg2: memref<272x128xbf16, #tpu.memory_space<vmem>>, %arg3: memref<8x128xf32, #tpu.memory_space<vmem>>, %arg4: memref<2x128xf32, #tpu.memory_space<vmem>>) attributes {dimension_semantics = [#tpu.dimension_semantics<parallel>], iteration_bounds = array<i64: 1>, scalar_prefetch = 0 : i64, scratch_operands = 0 : i64, tpu.core_type = #tpu.core_type<tc>, window_params = [{transform_indices = @transform_0, window_bounds = array<i64: 2, 16>}, {pipeline_mode = #tpu.pipeline_mode<synchronous>, transform_indices = @transform_1, window_bounds = array<i64: 272, 128>}, {pipeline_mode = #tpu.pipeline_mode<synchronous>, transform_indices = @transform_2, window_bounds = array<i64: 8, 128>}, {transform_indices = @transform_3, window_bounds = array<i64: 2, 128>}]} {
    %c0 = arith.constant 0 : index
    %c0_0 = arith.constant 0 : index
    %0 = vector.load %arg1[%c0, %c0_0] : memref<2x16xf32, #tpu.memory_space<vmem>>, vector<2x16xf32>
    %1 = arith.truncf %0 : vector<2x16xf32> to vector<2x16xbf16>
    %c0_1 = arith.constant 0 : index
    %c0_2 = arith.constant 0 : index
    %2 = vector.load %arg2[%c0_1, %c0_2] : memref<272x128xbf16, #tpu.memory_space<vmem>>, vector<16x128xbf16>
    %c16 = arith.constant 16 : index
    %c0_3 = arith.constant 0 : index
    %3 = vector.load %arg2[%c16, %c0_3] : memref<272x128xbf16, #tpu.memory_space<vmem>>, vector<128x128xbf16>
    %c144 = arith.constant 144 : index
    %c0_4 = arith.constant 0 : index
    %4 = vector.load %arg2[%c144, %c0_4] : memref<272x128xbf16, #tpu.memory_space<vmem>>, vector<128x128xbf16>
    %c0_5 = arith.constant 0 : index
    %c0_6 = arith.constant 0 : index
    %5 = vector.load %arg3[%c0_5, %c0_6] : memref<8x128xf32, #tpu.memory_space<vmem>>, vector<1x128xf32>
    %c1 = arith.constant 1 : index
    %c0_7 = arith.constant 0 : index
    %6 = vector.load %arg3[%c1, %c0_7] : memref<8x128xf32, #tpu.memory_space<vmem>>, vector<1x128xf32>
    %c2 = arith.constant 2 : index
    %c0_8 = arith.constant 0 : index
    %7 = vector.load %arg3[%c2, %c0_8] : memref<8x128xf32, #tpu.memory_space<vmem>>, vector<1x128xf32>
    %cst = arith.constant dense<0.000000e+00> : vector<2x128xf32>
    %8 = tpu.matmul %1, %2, %cst {dimension_numbers = #tpu.dot_dimension_numbers<[1], [0], [0], [1], [0, 0, 1, 1], [], []>} : vector<2x16xbf16>, vector<16x128xbf16>, vector<2x128xf32> -> vector<2x128xf32>
    %9 = vector.broadcast %5 : vector<1x128xf32> to vector<2x128xf32>
    %10 = arith.addf %8, %9 : vector<2x128xf32>
    %cst_9 = arith.constant 0.000000e+00 : f32
    %11 = vector.broadcast %cst_9 : f32 to vector<2x128xf32>
    %12 = arith.maximumf %10, %11 : vector<2x128xf32>
    %13 = arith.truncf %12 : vector<2x128xf32> to vector<2x128xbf16>
    %cst_10 = arith.constant dense<0.000000e+00> : vector<2x128xf32>
    %14 = tpu.matmul %13, %3, %cst_10 {dimension_numbers = #tpu.dot_dimension_numbers<[1], [0], [0], [1], [0, 0, 1, 1], [], []>} : vector<2x128xbf16>, vector<128x128xbf16>, vector<2x128xf32> -> vector<2x128xf32>
    %15 = vector.broadcast %6 : vector<1x128xf32> to vector<2x128xf32>
    %16 = arith.addf %14, %15 : vector<2x128xf32>
    %cst_11 = arith.constant 0.000000e+00 : f32
    %17 = vector.broadcast %cst_11 : f32 to vector<2x128xf32>
    %18 = arith.maximumf %16, %17 : vector<2x128xf32>
    %19 = arith.truncf %18 : vector<2x128xf32> to vector<2x128xbf16>
    %cst_12 = arith.constant dense<0.000000e+00> : vector<2x128xf32>
    %20 = tpu.matmul %19, %4, %cst_12 {dimension_numbers = #tpu.dot_dimension_numbers<[1], [0], [0], [1], [0, 0, 1, 1], [], []>} : vector<2x128xbf16>, vector<128x128xbf16>, vector<2x128xf32> -> vector<2x128xf32>
    %21 = vector.broadcast %7 : vector<1x128xf32> to vector<2x128xf32>
    %22 = arith.addf %20, %21 : vector<2x128xf32>
    %c0_13 = arith.constant 0 : index
    %c0_14 = arith.constant 0 : index
    %23 = vector.load %arg4[%c0_13, %c0_14] : memref<2x128xf32, #tpu.memory_space<vmem>>, vector<2x128xf32>
    tpu.vector_store %arg4[%c0_13, %c0_14], %22 {strides = array<i32>} : memref<2x128xf32, #tpu.memory_space<vmem>>, vector<2x128xf32>,
    return
  }
  func.func @transform_0(%arg0: i32) -> (i32, i32) {
    %c0_i32 = arith.constant 0 : i32
    %c0_i32_0 = arith.constant 0 : i32
    return %arg0, %c0_i32 : i32, i32
  }
  func.func @transform_1(%arg0: i32) -> (i32, i32) {
    %c0_i32 = arith.constant 0 : i32
    %c0_i32_0 = arith.constant 0 : i32
    %c0_i32_1 = arith.constant 0 : i32
    return %c0_i32, %c0_i32_0 : i32, i32
  }
  func.func @transform_2(%arg0: i32) -> (i32, i32) {
    %c0_i32 = arith.constant 0 : i32
    %c0_i32_0 = arith.constant 0 : i32
    %c0_i32_1 = arith.constant 0 : i32
    return %c0_i32, %c0_i32_0 : i32, i32
  }
  func.func @transform_3(%arg0: i32) -> (i32, i32) {
    %c0_i32 = arith.constant 0 : i32
    %c0_i32_0 = arith.constant 0 : i32
    return %arg0, %c0_i32 : i32, i32
  }
}

</mosaic_0001>

<bundles_post_ra>
// kernel: tpu_custom_call.1
= control target key start
LH: loop header
LB: loop body
LE: loop exit
PB: predicated region body
PF: predicated region fallthrough
CT: control target
= control target key end

     0   :  { %8 = vsyncpa [#allocation3], 0  ;;  %s609_s0 = inlined_call_operand.hbm [shape: f32[2,16], index: 0, kind: input, shape index: {}]   ;;  %s610_s1 = inlined_call_operand.hbm [shape: bf16[272,128], index: 1, kind: input, shape index: {}]   ;;  %s611_s2 = inlined_call_operand.hbm [shape: f32[8,128], index: 2, kind: input, shape index: {}]   ;;  %s612_s3 = inlined_call_operand.hbm [shape: f32[2,128], index: 3, kind: output, shape index: {}]  }
   0x1   :  { %9 = vsyncpa [#allocation6], 0 }
   0x2   :  { %10 = vsyncpa [#allocation4], 0  ;;  %s549_s12 = smov [#allocation5]  }
   0x3   :  { %s26_s13 = sshll.u32 %s549_s12, 4  ;;  %s27_s13 = int_to_ptr.vmem [resolvable:$true] %s26_s13 }
   0x4   :  { %s471_s14 = scalar_lea.vmem %s27_s13, 2176  ;;  %p476_p1 = scmp.lt.s32.totalorder %s27_s13, %s27_s13 }
   0x5   :  { %p472_p0 = scmp.ne.s32.totalorder %s27_s13, %s471_s14  ;;  %p477_p2 = scmp.lt.s32.totalorder %s471_s14, %s471_s14 }
   0x7   :  { %p478_p3 = por %p477_p2, %p476_p1 }
   0x9   :  { %p479_p4 = pnand %p478_p3, %p472_p0 }
   0xb   :  { %482 = shalt.err (!%p479_p4)
}
   0xc   :  { %s550_s15 = smov 64   ;;  %s551_s16 = smov 4  }
   0xd   :  { %32 = dma.hbm_to_vmem [thread:$0]  %s610_s1, 2176, %s27_s13, [#allocation6], %s550_s15, %s550_s15, %s551_s16  }
   0xe   :  { %s552_s19 = smov [#allocation2]   ;;  %s553_s21 = smov [#allocation7]  }
   0xf   :  { %s17_s20 = sshll.u32 %s552_s19, 4  ;;  %s39_s22 = sshll.u32 %s553_s21, 4  ;;  %s18_s20 = int_to_ptr.vmem [resolvable:$true] %s17_s20  ;;  %s40_s22 = int_to_ptr.vmem [resolvable:$true] %s39_s22 }
  0x10   :  { %s491_s23 = scalar_lea.vmem %s18_s20, 32  ;;  %p496_p6 = scmp.lt.s32.totalorder %s18_s20, %s18_s20 }
  0x11   :  { %p492_p5 = scmp.ne.s32.totalorder %s18_s20, %s491_s23  ;;  %p497_p7 = scmp.lt.s32.totalorder %s491_s23, %s491_s23 }
  0x13   :  { %p498_p8 = por %p497_p7, %p496_p6 }
  0x15   :  { %p499_p9 = pnand %p498_p8, %p492_p5 }
  0x17   :  { %502 = shalt.err (!%p499_p9)
}
  0x18   :  { %20 = dma.hbm_to_vmem [thread:$0]  %s609_s0, 32, %s18_s20, [#allocation3]  }
  0x19   :  { %s511_s26 = scalar_lea.vmem %s40_s22, 128  ;;  %p516_p11 = scmp.lt.s32.totalorder %s40_s22, %s40_s22 }
  0x1a   :  { %p512_p10 = scmp.ne.s32.totalorder %s40_s22, %s511_s26  ;;  %p517_p12 = scmp.lt.s32.totalorder %s511_s26, %s511_s26 }
  0x1c   :  { %p518_p13 = por %p517_p12, %p516_p11 }
  0x1e   :  { %p519_p0 = pnand %p518_p13, %p512_p10 }
  0x20   :  { %522 = shalt.err (!%p519_p0)
}
  0x21   :  { %42 = dma.hbm_to_vmem [thread:$0]  %s611_s2, 128, %s40_s22, [#allocation6]  }
  0x22   :  { %543 = dma.done.wait [#allocation3], 32  }
  0x23   :  { %544 = vsyncadd [#allocation3], 4294967264 }
  0x24   :  { %545 = dma.done.wait [#allocation6], 2304  }
  0x25   :  { %546 = vsyncadd [#allocation6], 4294964992  ;;  %v554_v0 = vmov 0.0   ;;  %vm555_vm0 = vmmov 0   ;;  %v446_v1 = vld [vmem:[#allocation5] sm:$0xff]   ;;  %vm102_vm1 = vcmask 130048  }
  0x26   :  { %392 = vmatprep.subr.bf16.mxu0 %v554_v0  ;;  %394 = vmatprep.mubr.msk.bf16.mxu0 %vm555_vm0, %v554_v0  ;;  %v53_v2 = vld [vmem:[#allocation2] sm:$0x3]  ;;  %v447_v4 = vld [vmem:[#allocation5 + $0x40] sm:$0xff]   ;;  %v449_v6 = vld [vmem:[#allocation5 + $0x30] sm:$0xff]   ;;  %s556_s0 = smov [#allocation8]  }
  0x27   :  { %398 = vmatprep.subr.bf16.mxu1 %v554_v0  ;;  %414 = vmatprep.mubr.msk.bf16.mxu1 %vm555_vm0, %v554_v0  ;;  %v54_v3 = vpack.c.bf16 %v53_v2, %v53_v2  ;;  %v448_v5 = vld [vmem:[#allocation5 + $0x38] sm:$0xff]   ;;  %v450_v7 = vld [vmem:[#allocation5 + $0x28] sm:$0xff]   ;;  %v451_v8 = vld [vmem:[#allocation5 + $0x20] sm:$0xff]   ;;  %s341_s2 = sshll.u32 %s556_s0, 4  ;;  %s342_s2 = int_to_ptr.vmem [resolvable:$true] %s341_s2 }
  0x28   :  { %393 = vmatpush3.bf16.msra.mxu0 %v446_v1  ;;  %399 = vmatpush3.bf16.msra.mxu1 %v447_v4  ;;  %v452_v9 = vld [vmem:[#allocation5 + $0x18] sm:$0xff]   ;;  %v453_v10 = vld [vmem:[#allocation5 + $0x10] sm:$0xff]   ;;  %v454_v11 = vld [vmem:[#allocation5 + $0x8] sm:$0xff]   ;;  %s523_s28 = scalar_lea.vmem %s342_s2, 32  ;;  %p528_p2 = scmp.lt.s32.totalorder %s342_s2, %s342_s2 }
  0x29   :  { %418 = vmatprep.subr.bf16.mxu0 %v554_v0  ;;  %400 = vmatprep.subr.bf16.mxu1 %v554_v0  ;;  %v455_v12 = vld [vmem:[#allocation5 + $0x80] sm:$0xff]   ;;  %v456_v13 = vld [vmem:[#allocation5 + $0x78] sm:$0xff]   ;;  %v457_v14 = vld [vmem:[#allocation5 + $0x70] sm:$0xff]   ;;  %p524_p1 = scmp.ne.s32.totalorder %s342_s2, %s523_s28  ;;  %p529_p3 = scmp.lt.s32.totalorder %s523_s28, %s523_s28 }
  0x2a   :  { %v458_v15 = vld [vmem:[#allocation5 + $0x68] sm:$0xff]   ;;  %v459_v16 = vld [vmem:[#allocation5 + $0x60] sm:$0xff]   ;;  %v460_v17 = vld [vmem:[#allocation5 + $0x58] sm:$0xff]  }
  0x2b   :  { %395 = vmatmul.mubr.msk.bf16.vlgmr.msra.gmra.mxu0 %vm102_vm1, %v54_v3  ;;  %v351_v18 = vld [vmem:[#allocation7] ss:$0 sm:$0xff]  ;;  %v461_v26 = vld [vmem:[#allocation5 + $0x50] sm:$0xff]   ;;  %v354_v28 = vld [vmem:[#allocation7 + $0x1] ss:$0 sm:$0xff]  ;;  %p530_p4 = por %p529_p3, %p528_p2 }
  0x2c   :  { %434 = vmatprep.mubr.msk.bf16.mxu0 %vm555_vm0, %v554_v0  ;;  %401 = vmatpush3.bf16.msra.mxu1 %v448_v5  ;;  %v462_v27 = vld [vmem:[#allocation5 + $0x48] sm:$0xff]  }
  0x2d   :  { %402 = vmatprep.subr.bf16.mxu1 %v554_v0  ;;  %419 = vmatpush3.bf16.msra.mxu0 %v455_v12  ;;  %v363_v36 = vld [vmem:[#allocation7 + $0x2] ss:$0 sm:$0xff]  ;;  %p531_p5 = pnand %p530_p4, %p524_p1 }
  0x2e   :  { %420 = vmatprep.subr.bf16.mxu0 %v554_v0 }
  0x30   :  { %403 = vmatpush3.bf16.msra.mxu1 %v449_v6 }
  0x31   :  { %404 = vmatprep.subr.bf16.mxu1 %v554_v0  ;;  %421 = vmatpush3.bf16.msra.mxu0 %v456_v13 }
  0x32   :  { %422 = vmatprep.subr.bf16.mxu0 %v554_v0 }
  0x34   :  { %405 = vmatpush3.bf16.msra.mxu1 %v450_v7 }
  0x35   :  { %406 = vmatprep.subr.bf16.mxu1 %v554_v0  ;;  %423 = vmatpush3.bf16.msra.mxu0 %v457_v14 }
  0x36   :  { %424 = vmatprep.subr.bf16.mxu0 %v554_v0 }
  0x38   :  { %407 = vmatpush3.bf16.msra.mxu1 %v451_v8 }
  0x39   :  { %408 = vmatprep.subr.bf16.mxu1 %v554_v0  ;;  %425 = vmatpush3.bf16.msra.mxu0 %v458_v15 }
  0x3a   :  { %426 = vmatprep.subr.bf16.mxu0 %v554_v0 }
  0x3c   :  { %409 = vmatpush3.bf16.msra.mxu1 %v452_v9 }
  0x3d   :  { %410 = vmatprep.subr.bf16.mxu1 %v554_v0  ;;  %427 = vmatpush3.bf16.msra.mxu0 %v459_v16 }
  0x3e   :  { %428 = vmatprep.subr.bf16.mxu0 %v554_v0 }
  0x40   :  { %411 = vmatpush3.bf16.msra.mxu1 %v453_v10 }
  0x41   :  { %412 = vmatprep.subr.bf16.mxu1 %v554_v0  ;;  %429 = vmatpush3.bf16.msra.mxu0 %v460_v17 }
  0x42   :  { %430 = vmatprep.subr.bf16.mxu0 %v554_v0 }
  0x44   :  { %413 = vmatpush3.bf16.msra.mxu1 %v454_v11 }
  0x45   :  { %431 = vmatpush3.bf16.msra.mxu0 %v461_v26 }
  0x46   :  { %432 = vmatprep.subr.bf16.mxu0 %v554_v0 }
  0x49   :  { %433 = vmatpush3.bf16.msra.mxu0 %v462_v27 }
  0xeb   :  { %v140_v19 = vpop.f32.mrf.mxu0 }
  0xec   :  { %v141_v20 = vadd.f32 %v351_v18, %v140_v19 }
  0xed   :  { %v396_v21 = vpop.f32.mrf.mxu0 }
  0xee   :  { %v146_v22 = vmax.f32 %v141_v20, 0.0 }
  0xef   :  { %v143_v23 = vpop.f32.mrf.mxu0 }
  0xf0   :  { %v147_v24 = vpack.c.bf16 %v146_v22, %v146_v22 }
  0xf1   :  { %v397_v25 = vpop.f32.mrf.mxu0 }
  0xf2   :  { %415 = vmatmul.mubr.bf16.vlgmr.msra.gmra.mxu1 %v147_v24 }
 0x1b2   :  { %v234_v29 = vpop.f32.mrf.mxu1 }
 0x1b3   :  { %v235_v30 = vadd.f32 %v354_v28, %v234_v29 }
 0x1b4   :  { %v416_v31 = vpop.f32.mrf.mxu1 }
 0x1b5   :  { %v240_v32 = vmax.f32 %v235_v30, 0.0 }
 0x1b6   :  { %v237_v33 = vpop.f32.mrf.mxu1 }
 0x1b7   :  { %v241_v34 = vpack.c.bf16 %v240_v32, %v240_v32 }
 0x1b8   :  { %v417_v35 = vpop.f32.mrf.mxu1 }
 0x1b9   :  { %435 = vmatmul.mubr.bf16.vlgmr.msra.gmra.mxu0 %v241_v34 }
 0x279   :  { %v328_v37 = vpop.f32.mrf.mxu0 }
 0x27a   :  { %v329_v38 = vadd.f32 %v363_v36, %v328_v37 }
 0x27b   :  { %v436_v39 = vpop.f32.mrf.mxu0 }
 0x27c   :  { %334 = vst [vmem:[#allocation8] sm:$0x3] %v329_v38 }
 0x27d   :  { %v331_v40 = vpop.f32.mrf.mxu0 }
 0x27e   :  { %534 = shalt.err (!%p531_p5)
}
 0x27f   :  { %344 = dma.vmem_to_hbm [thread:$0]  %s342_s2, 32, %s612_s3, [#allocation4]   ;;  %v437_v41 = vpop.f32.mrf.mxu0 }
 0x280   :  { %547 = dma.done.wait [#allocation4], 32  }
 0x281   :  { %548 = vsyncadd [#allocation4], 4294967264 }
 0x282   :  { %348 = vsyncpa [#allocation3], 1 }
 0x283   :  { %349 = vsyncpa [#allocation6], 1 }
 0x284   :  { %350 = vsyncpa [#allocation4], 1 }

</bundles_post_ra>
